<compile_context>
chip_gen: v5e
topology: v5e:2x2
jax: 0.10.0
libtpu: 0.0.40
codegen_flags: <defaults>
</compile_context>

<pallas_src>
import functools

import jax
import jax.numpy as jnp
from jax.experimental import pallas as pl
from jax.experimental.pallas import tpu as pltpu

_LANE = 128
_NEG_INF = -1e30


def _round_up(x, m):
    return ((x + m - 1) // m) * m


def _vmem_limit_bytes():
    """Scoped VMEM limit derived from the chip (v5e/v6e: 128 MiB, v7x: 64 MiB)."""
    try:
        info = pltpu.get_tpu_info()
        cap = int(getattr(info, "vmem_capacity_bytes", 64 * 1024 * 1024))
    except Exception:
        cap = 64 * 1024 * 1024                      # conservative (v7x per-core)
    return int(min(cap * 3 // 4, 96 * 1024 * 1024))  # leave headroom for scratch


def _fan_kernel(x_ref,
                wbb_ref, bbb_ref,     # backbone fc (1/HW folded): (C, F), (1, F)
                watt_ref, batt_ref,   # fused attention proj:      (F, 2A), (1, 2A)
                wfu_ref, bfu_ref,     # full_att:                  (1, A), (1, 1)
                wfc_ref, bfc_ref,     # fcn (padded):              (F, NC_PAD), (1, NC_PAD)
                out_ref,              # (B, NC_PAD)
                acc_ref,              # VMEM scratch (B, C, 128) f32
                *, hw, tile_hw, att_dtype=jnp.float32):
    s = pl.program_id(0)
    n_s = pl.num_programs(0)

    @pl.when(s == 0)
    def _init():
        acc_ref[...] = jnp.zeros_like(acc_ref)

    # ---- global average pool, tiled over H*W ---------------------------------
    # Per-128-lane ref loads + up to 4 independent partial accumulators: no full
    # tile materialization in vregs, no serial add chain.
    bB, bC = x_ref.shape[0], x_ref.shape[1]
    n_slices = tile_hw // _LANE
    n_tiles_static = -(-hw // tile_hw)
    rem_last = hw - (n_tiles_static - 1) * tile_hw   # valid lanes in final tile

    lane = None
    if rem_last < tile_hw:
        # Ragged tail exists somewhere in the grid: hoist one lane-index iota.
        lane = jax.lax.broadcasted_iota(jnp.int32, (bB, bC, _LANE), 2)

    n_par = min(4, n_slices)
    partials = [None] * n_par
    for k in range(n_slices):
        sl = x_ref[:, :, k * _LANE:(k + 1) * _LANE].astype(jnp.float32)
        if (k + 1) * _LANE > rem_last:
            # This slice position can read past HW on the last grid step: zero
            # the OOB lanes (garbage) before accumulating.  For earlier steps
            # `valid >= 128` and the mask is all-true.
            valid = hw - (s * tile_hw + k * _LANE)
            sl = jnp.where(lane < valid, sl, 0.0)
        p = k % n_par
        partials[p] = sl if partials[p] is None else partials[p] + sl
    while len(partials) > 1:                          # tree-combine the partials
        partials = [partials[i] + partials[i + 1] if i + 1 < len(partials)
                    else partials[i]
                    for i in range(0, len(partials), 2)]
    acc_ref[...] += partials[0]                       # (B, C, 128) lane-partials

    # ---- everything after the pool runs once, on the last grid step ----------
    @pl.when(s == n_s - 1)
    def _epilogue():
        A = watt_ref.shape[1] // 2

        # single cross-lane reduce of the pooled sums (1/HW already in wbb).
        pooled = jnp.sum(acc_ref[...], axis=-1)                              # (B, C)
        feat = jnp.dot(pooled, wbb_ref[...],
                       preferred_element_type=jnp.float32) + bbb_ref[...]    # (B, F)

        # fused feature_att / (hidden -> hidden_att) projections.
        att = jnp.dot(feat, watt_ref[...],
                      preferred_element_type=jnp.float32) + batt_ref[...]    # (B, 2A)
        att1 = att[:, :A]
        att2 = att[:, A:]

        # PyTorch: att1 (B,A) + att2.unsqueeze(1) (B,1,A) -> (B,B,A) (feat is 2-D)
        z = att1[None, :, :] + att2[:, None, :]                              # implicit bcast
        sig = jax.nn.sigmoid(z.astype(att_dtype)).astype(jnp.float32)        # (B, B, A)

        # full_att: weighted reduce over A, then squeeze(2) -> (B, B)
        atten = jnp.sum(sig * wfu_ref[...], axis=-1) + bfu_ref[...]

        # alpha = softmax(atten, dim=1)  (approx recip OK: internal weights)
        m = jnp.max(atten, axis=1, keepdims=True)
        e = jnp.exp(atten - m)
        alpha = e * pl.reciprocal(jnp.sum(e, axis=1, keepdims=True), approx=True)

        # context[i] = sum_j alpha[i, j] * feat[j]
        context = jnp.dot(alpha, feat, preferred_element_type=jnp.float32)   # (B, F)

        # fcn (pad columns carry -1e30 bias -> exp underflows to 0), then the
        # FINAL softmax with an EXACT divide so output rows sum to 1.
        logits = jnp.dot(context, wfc_ref[...],
                         preferred_element_type=jnp.float32) + bfc_ref[...]  # (B, NC_PAD)
        m2 = jnp.max(logits, axis=1, keepdims=True)
        e2 = jnp.exp(logits - m2)
        out_ref[...] = e2 / jnp.sum(e2, axis=1, keepdims=True)


def _prepare_params(params, hw):
    """Host-side weight folding: GAP scale into w_bb, hidden Linear into
    hidden_att (concat with feature_att), num_classes padded to 128 lanes."""
    f32 = jnp.float32
    w_bb = (params["w_bb"] / float(hw)).astype(f32)            # fold mean's 1/HW
    b_bb = params["b_bb"].astype(f32)

    # Valid fold: the module applies no nonlinearity between hidden and hidden_att.
    w_ha_eff = params["w_h"] @ params["w_ha"]                   # (F, A)
    b_ha_eff = params["b_h"] @ params["w_ha"] + params["b_ha"]  # (1, A)
    w_att = jnp.concatenate([params["w_fa"], w_ha_eff], axis=1).astype(f32)  # (F, 2A)
    b_att = jnp.concatenate([params["b_fa"], b_ha_eff], axis=1).astype(f32)  # (1, 2A)

    nc = params["w_fcn"].shape[1]
    nc_pad = _round_up(nc, _LANE)
    w_fcn = jnp.pad(params["w_fcn"], ((0, 0), (0, nc_pad - nc))).astype(f32)
    b_fcn = jnp.concatenate(
        [params["b_fcn"].astype(f32),
         jnp.full((1, nc_pad - nc), _NEG_INF, f32)], axis=1)

    return dict(w_bb=w_bb, b_bb=b_bb, w_att=w_att, b_att=b_att,
                w_full=params["w_full"].astype(f32),
                b_full=params["b_full"].astype(f32),
                w_fcn=w_fcn, b_fcn=b_fcn, num_classes=nc, nc_pad=nc_pad)


def feature_attention_forward(x_nchw, params, *,
                              attention_dtype=jnp.float32, max_tile_hw=None):
    B, C, H, W = x_nchw.shape
    HW = H * W
    prep = _prepare_params(params, HW)
    nc, nc_pad = prep["num_classes"], prep["nc_pad"]
    F = prep["w_bb"].shape[1]
    A2 = prep["w_att"].shape[1]
    A = A2 // 2

    vmem_limit = _vmem_limit_bytes()

    # Spatial tile: largest lane-aligned tile whose double-buffered slab stays
    # within half the scoped VMEM limit, hard-capped at 8192 lanes to bound the
    # unrolled per-slice accumulation loop.
    itemsize = jnp.dtype(x_nchw.dtype).itemsize
    row_bytes = B * C * itemsize
    budget_per_buf = vmem_limit // 4                   # x uses 2 buffers
    tile_cap = (budget_per_buf // row_bytes) // _LANE * _LANE
    tile_cap = max(_LANE, min(8192, tile_cap))
    if max_tile_hw is not None:
        tile_cap = max(_LANE, min(tile_cap, (max_tile_hw // _LANE) * _LANE))
    tile_hw = min(_round_up(HW, _LANE), tile_cap)
    n_tiles = pl.cdiv(HW, tile_hw)

    # No host-side pad / astype: x is read exactly once; the ragged tail (if
    # any) is masked inside the kernel; widening happens per 128-lane slice.
    x = x_nchw.reshape(B, C, HW)

    weights = (prep["w_bb"], prep["b_bb"], prep["w_att"], prep["b_att"],
               prep["w_full"], prep["b_full"], prep["w_fcn"], prep["b_fcn"])

    def _full(w):
        return pl.BlockSpec(w.shape, lambda s_: (0, 0))   # resident, DMA'd once

    cost = pl.CostEstimate(
        flops=int(2 * B * C * HW + 2 * B * C * F + 2 * B * F * A2
                  + 5 * B * B * A + 2 * B * B * F + 2 * B * F * nc_pad
                  + 6 * B * B + 6 * B * nc_pad),
        transcendentals=int(B * B * A + B * B + B * nc_pad + B),
        bytes_accessed=int(itemsize * B * C * HW + 4 * B * nc_pad
                           + 4 * sum(int(w.size) for w in weights)),
    )

    grid_spec = pltpu.PrefetchScalarGridSpec(
        num_scalar_prefetch=0,
        grid=(n_tiles,),
        in_specs=[pl.BlockSpec((B, C, tile_hw), lambda s_: (0, 0, s_))]
                 + [_full(w) for w in weights],
        out_specs=pl.BlockSpec((B, nc_pad), lambda s_: (0, 0)),
        scratch_shapes=[pltpu.VMEM((B, C, _LANE), jnp.float32)],
    )

    out_pad = pl.pallas_call(
        functools.partial(_fan_kernel, hw=HW, tile_hw=tile_hw,
                          att_dtype=attention_dtype),
        out_shape=jax.ShapeDtypeStruct((B, nc_pad), jnp.float32),
        grid_spec=grid_spec,
        compiler_params=pltpu.CompilerParams(
            dimension_semantics=("arbitrary",),   # single axis = spatial reduction
            vmem_limit_bytes=vmem_limit,
        ),
        cost_estimate=cost,
    )(x, *weights)

    return out_pad[:, :nc]


def init_params(key, num_features, feature_dim, attention_dim, num_classes):
    hidden_dim = feature_dim // 2
    ks = jax.random.split(key, 12)

    def linear(kw, kb, fan_in, fan_out):
        bound = fan_in ** -0.5
        w = jax.random.uniform(kw, (fan_in, fan_out), jnp.float32, -bound, bound)
        b = jax.random.uniform(kb, (1, fan_out), jnp.float32, -bound, bound)
        return w, b

    w_bb, b_bb = linear(ks[0], ks[1], num_features, feature_dim)
    w_h, b_h = linear(ks[2], ks[3], feature_dim, hidden_dim)
    w_fa, b_fa = linear(ks[4], ks[5], feature_dim, attention_dim)
    w_ha, b_ha = linear(ks[6], ks[7], hidden_dim, attention_dim)
    w_full_t, b_full = linear(ks[8], ks[9], attention_dim, 1)   # (A,1), (1,1)
    w_fcn, b_fcn = linear(ks[10], ks[11], feature_dim, num_classes)

    return {
        "w_bb": w_bb, "b_bb": b_bb,
        "w_h": w_h, "b_h": b_h,
        "w_fa": w_fa, "b_fa": b_fa,
        "w_ha": w_ha, "b_ha": b_ha,
        "w_full": w_full_t.T, "b_full": b_full,   # w_full stored as (1, A)
        "w_fcn": w_fcn, "b_fcn": b_fcn,
    }


def reference_forward(x_nchw, p):
    """Pure-JAX reference of the same math with PyTorch semantics (unfolded)."""
    B, C, H, W = x_nchw.shape
    pooled = jnp.mean(x_nchw.reshape(B, C, H * W).astype(jnp.float32), axis=-1)
    feat = pooled @ p["w_bb"] + p["b_bb"]
    hidden = feat @ p["w_h"] + p["b_h"]
    att1 = feat @ p["w_fa"] + p["b_fa"]
    att2 = hidden @ p["w_ha"] + p["b_ha"]
    sig = jax.nn.sigmoid(att1[None, :, :] + att2[:, None, :])        # (B,B,A)
    atten = jnp.sum(sig * p["w_full"][0][None, None, :], axis=-1) + p["b_full"][0, 0]
    alpha = jax.nn.softmax(atten, axis=1)
    context = alpha @ feat
    logits = context @ p["w_fcn"] + p["b_fcn"]
    return jax.nn.softmax(logits, axis=1)


if __name__ == "__main__":
    B, C, H, W = 2, 4, 16, 16
    feature_dim, attention_dim, num_classes = 32, 16, 8

    key = jax.random.PRNGKey(0)
    k_x, k_p, k_x2 = jax.random.split(key, 3)
    x = jax.random.normal(k_x, (B, C, H, W), dtype=jnp.float32)
    params = init_params(k_p, C, feature_dim, attention_dim, num_classes)

    # Case 1: HW = 256 (lane-aligned, single tile).
    out = jax.block_until_ready(feature_attention_forward(x, params))
    ref = reference_forward(x, params)
    assert out.shape == (B, num_classes), out.shape
    # Exact divide in the final softmax -> rows sum to 1 to f32 precision.
    assert bool(jnp.allclose(jnp.sum(out, axis=1), 1.0, atol=1e-5)), out
    # Host-side weight folding (float reassociation) + approx recip in the
    # internal alpha softmax -> 1e-3 tolerance vs the unfolded reference.
    assert bool(jnp.allclose(out, ref, atol=1e-3, rtol=1e-3)), (out, ref)

    # Case 2: HW = 225 (not a multiple of 128) with a forced 128-lane tile ->
    # exercises the multi-step pipelined reduction and the in-kernel tail mask.
    x2 = jax.random.normal(k_x2, (B, C, 15, 15), dtype=jnp.float32)
    out2 = jax.block_until_ready(
        feature_attention_forward(x2, params, max_tile_hw=128))
    ref2 = reference_forward(x2, params)
    assert bool(jnp.allclose(jnp.sum(out2, axis=1), 1.0, atol=1e-5)), out2
    assert bool(jnp.allclose(out2, ref2, atol=1e-3, rtol=1e-3)), (out2, ref2)

    print("KERNEL_OK")
</pallas_src>

<mosaic_0001>
module attributes {stable_mosaic.version = 11 : i64} {
  func.func @_fan_kernel(%arg0: i32, %arg1: memref<2x4x256xf32, #tpu.memory_space<vmem>>, %arg2: memref<4x32xf32, #tpu.memory_space<vmem>>, %arg3: memref<1x32xf32, #tpu.memory_space<vmem>>, %arg4: memref<32x32xf32, #tpu.memory_space<vmem>>, %arg5: memref<1x32xf32, #tpu.memory_space<vmem>>, %arg6: memref<1x16xf32, #tpu.memory_space<vmem>>, %arg7: memref<1x1xf32, #tpu.memory_space<vmem>>, %arg8: memref<32x128xf32, #tpu.memory_space<vmem>>, %arg9: memref<1x128xf32, #tpu.memory_space<vmem>>, %arg10: memref<2x128xf32, #tpu.memory_space<vmem>>, %arg11: memref<2x4x128xf32, #tpu.memory_space<vmem>>) attributes {dimension_semantics = [#tpu.dimension_semantics<arbitrary>], iteration_bounds = array<i64: 1>, scalar_prefetch = 0 : i64, scratch_operands = 1 : i64, tpu.core_type = #tpu.core_type<tc>, window_params = [{transform_indices = @transform_0, window_bounds = array<i64: 2, 4, 256>}, {pipeline_mode = #tpu.pipeline_mode<synchronous>, transform_indices = @transform_1, window_bounds = array<i64: 4, 32>}, {pipeline_mode = #tpu.pipeline_mode<synchronous>, transform_indices = @transform_2, window_bounds = array<i64: 1, 32>}, {pipeline_mode = #tpu.pipeline_mode<synchronous>, transform_indices = @transform_3, window_bounds = array<i64: 32, 32>}, {pipeline_mode = #tpu.pipeline_mode<synchronous>, transform_indices = @transform_4, window_bounds = array<i64: 1, 32>}, {pipeline_mode = #tpu.pipeline_mode<synchronous>, transform_indices = @transform_5, window_bounds = array<i64: 1, 16>}, {pipeline_mode = #tpu.pipeline_mode<synchronous>, transform_indices = @transform_6, window_bounds = array<i64: 1, 1>}, {pipeline_mode = #tpu.pipeline_mode<synchronous>, transform_indices = @transform_7, window_bounds = array<i64: 32, 128>}, {pipeline_mode = #tpu.pipeline_mode<synchronous>, transform_indices = @transform_8, window_bounds = array<i64: 1, 128>}, {pipeline_mode = #tpu.pipeline_mode<synchronous>, transform_indices = @transform_9, window_bounds = array<i64: 2, 128>}]} {
    %c0_i32 = arith.constant 0 : i32
    %0 = arith.cmpi eq, %arg0, %c0_i32 : i32
    %1 = arith.extui %0 : i1 to i32
    %c0_i32_0 = arith.constant 0 : i32
    %2 = arith.cmpi ne, %1, %c0_i32_0 : i32
    scf.if %2 {
      %cst = arith.constant 0.000000e+00 : f32
      %12 = vector.broadcast %cst : f32 to vector<2x4x128xf32>
      %c0_13 = arith.constant 0 : index
      %c0_14 = arith.constant 0 : index
      %c0_15 = arith.constant 0 : index
      %13 = vector.load %arg11[%c0_13, %c0_14, %c0_15] : memref<2x4x128xf32, #tpu.memory_space<vmem>>, vector<2x4x128xf32>
      tpu.vector_store %arg11[%c0_13, %c0_14, %c0_15], %12 {strides = array<i32>} : memref<2x4x128xf32, #tpu.memory_space<vmem>>, vector<2x4x128xf32>,
    } else {
    }
    %c0 = arith.constant 0 : index
    %c0_1 = arith.constant 0 : index
    %c0_2 = arith.constant 0 : index
    %3 = vector.load %arg1[%c0, %c0_1, %c0_2] : memref<2x4x256xf32, #tpu.memory_space<vmem>>, vector<2x4x128xf32>
    %c0_3 = arith.constant 0 : index
    %c0_4 = arith.constant 0 : index
    %c128 = arith.constant 128 : index
    %4 = vector.load %arg1[%c0_3, %c0_4, %c128] : memref<2x4x256xf32, #tpu.memory_space<vmem>>, vector<2x4x128xf32>
    %5 = arith.addf %3, %4 : vector<2x4x128xf32>
    %c0_5 = arith.constant 0 : index
    %c0_6 = arith.constant 0 : index
    %c0_7 = arith.constant 0 : index
    %6 = vector.load %arg11[%c0_5, %c0_6, %c0_7] : memref<2x4x128xf32, #tpu.memory_space<vmem>>, vector<2x4x128xf32>
    %7 = arith.addf %6, %5 : vector<2x4x128xf32>
    %c0_8 = arith.constant 0 : index
    %c0_9 = arith.constant 0 : index
    %c0_10 = arith.constant 0 : index
    %8 = vector.load %arg11[%c0_8, %c0_9, %c0_10] : memref<2x4x128xf32, #tpu.memory_space<vmem>>, vector<2x4x128xf32>
    tpu.vector_store %arg11[%c0_8, %c0_9, %c0_10], %7 {strides = array<i32>} : memref<2x4x128xf32, #tpu.memory_space<vmem>>, vector<2x4x128xf32>,
    %c0_i32_11 = arith.constant 0 : i32
    %9 = arith.cmpi eq, %arg0, %c0_i32_11 : i32
    %10 = arith.extui %9 : i1 to i32
    %c0_i32_12 = arith.constant 0 : i32
    %11 = arith.cmpi ne, %10, %c0_i32_12 : i32
    scf.if %11 {
      %c0_13 = arith.constant 0 : index
      %c0_14 = arith.constant 0 : index
      %c0_15 = arith.constant 0 : index
      %12 = vector.load %arg11[%c0_13, %c0_14, %c0_15] : memref<2x4x128xf32, #tpu.memory_space<vmem>>, vector<2x4x128xf32>
      %cst = arith.constant dense<0.000000e+00> : vector<2x4xf32>
      %13 = vector.multi_reduction <add>, %12, %cst [2] : vector<2x4x128xf32> to vector<2x4xf32>
      %c0_16 = arith.constant 0 : index
      %c0_17 = arith.constant 0 : index
      %14 = vector.load %arg2[%c0_16, %c0_17] : memref<4x32xf32, #tpu.memory_space<vmem>>, vector<4x32xf32>
      %cst_18 = arith.constant dense<0.000000e+00> : vector<2x32xf32>
      %15 = tpu.matmul %13, %14, %cst_18 {dimension_numbers = #tpu.dot_dimension_numbers<[1], [0], [0], [1], [0, 0, 1, 1], [], []>} : vector<2x4xf32>, vector<4x32xf32>, vector<2x32xf32> -> vector<2x32xf32>
      %c0_19 = arith.constant 0 : index
      %c0_20 = arith.constant 0 : index
      %16 = vector.load %arg3[%c0_19, %c0_20] : memref<1x32xf32, #tpu.memory_space<vmem>>, vector<1x32xf32>
      %17 = vector.broadcast %16 : vector<1x32xf32> to vector<2x32xf32>
      %18 = arith.addf %15, %17 : vector<2x32xf32>
      %c0_21 = arith.constant 0 : index
      %c0_22 = arith.constant 0 : index
      %19 = vector.load %arg4[%c0_21, %c0_22] : memref<32x32xf32, #tpu.memory_space<vmem>>, vector<32x32xf32>
      %cst_23 = arith.constant dense<0.000000e+00> : vector<2x32xf32>
      %20 = tpu.matmul %18, %19, %cst_23 {dimension_numbers = #tpu.dot_dimension_numbers<[1], [0], [0], [1], [0, 0, 1, 1], [], []>} : vector<2x32xf32>, vector<32x32xf32>, vector<2x32xf32> -> vector<2x32xf32>
      %c0_24 = arith.constant 0 : index
      %c0_25 = arith.constant 0 : index
      %21 = vector.load %arg5[%c0_24, %c0_25] : memref<1x32xf32, #tpu.memory_space<vmem>>, vector<1x32xf32>
      %22 = vector.broadcast %21 : vector<1x32xf32> to vector<2x32xf32>
      %23 = arith.addf %20, %22 : vector<2x32xf32>
      %24 = vector.extract_strided_slice %23 {offsets = [0, 0], sizes = [2, 16], strides = [1, 1]} : vector<2x32xf32> to vector<2x16xf32>
      %25 = vector.extract_strided_slice %23 {offsets = [0, 16], sizes = [2, 16], strides = [1, 1]} : vector<2x32xf32> to vector<2x16xf32>
      %26 = vector.shape_cast %24 : vector<2x16xf32> to vector<1x2x16xf32>
      %27 = vector.shape_cast %25 : vector<2x16xf32> to vector<2x1x16xf32>
      %28 = vector.broadcast %26 : vector<1x2x16xf32> to vector<2x2x16xf32>
      %29 = vector.broadcast %27 : vector<2x1x16xf32> to vector<2x2x16xf32>
      %30 = arith.addf %28, %29 : vector<2x2x16xf32>
      %31 = arith.negf %30 : vector<2x2x16xf32>
      %32 = math.exp %31 : vector<2x2x16xf32>
      %cst_26 = arith.constant 1.000000e+00 : f32
      %33 = vector.broadcast %cst_26 : f32 to vector<2x2x16xf32>
      %34 = arith.addf %33, %32 : vector<2x2x16xf32>
      %35 = arith.divf %33, %34 : vector<2x2x16xf32>
      %c0_27 = arith.constant 0 : index
      %c0_28 = arith.constant 0 : index
      %36 = vector.load %arg6[%c0_27, %c0_28] : memref<1x16xf32, #tpu.memory_space<vmem>>, vector<1x16xf32>
      %37 = vector.shape_cast %36 : vector<1x16xf32> to vector<1x1x16xf32>
      %38 = vector.broadcast %37 : vector<1x1x16xf32> to vector<2x2x16xf32>
      %39 = arith.mulf %35, %38 : vector<2x2x16xf32>
      %cst_29 = arith.constant dense<0.000000e+00> : vector<2x2xf32>
      %40 = vector.multi_reduction <add>, %39, %cst_29 [2] : vector<2x2x16xf32> to vector<2x2xf32>
      %c0_30 = arith.constant 0 : index
      %c0_31 = arith.constant 0 : index
      %41 = vector.load %arg7[%c0_30, %c0_31] : memref<1x1xf32, #tpu.memory_space<vmem>>, vector<1x1xf32>
      %42 = vector.broadcast %41 : vector<1x1xf32> to vector<2x2xf32>
      %43 = arith.addf %40, %42 : vector<2x2xf32>
      %cst_32 = arith.constant dense<0xFF800000> : vector<2xf32>
      %44 = vector.multi_reduction <maximumf>, %43, %cst_32 [1] : vector<2x2xf32> to vector<2xf32>
      %45 = vector.shape_cast %44 : vector<2xf32> to vector<2x1xf32>
      %46 = vector.broadcast %45 : vector<2x1xf32> to vector<2x2xf32>
      %47 = arith.subf %43, %46 : vector<2x2xf32>
      %48 = math.exp %47 : vector<2x2xf32>
      %cst_33 = arith.constant dense<0.000000e+00> : vector<2xf32>
      %49 = vector.multi_reduction <add>, %48, %cst_33 [1] : vector<2x2xf32> to vector<2xf32>
      %50 = vector.shape_cast %49 : vector<2xf32> to vector<2x1xf32>
      %51 = tpu.reciprocal %50 {approx = true} : vector<2x1xf32> -> vector<2x1xf32>
      %52 = vector.broadcast %51 : vector<2x1xf32> to vector<2x2xf32>
      %53 = arith.mulf %48, %52 : vector<2x2xf32>
      %cst_34 = arith.constant dense<0.000000e+00> : vector<2x32xf32>
      %54 = tpu.matmul %53, %18, %cst_34 {dimension_numbers = #tpu.dot_dimension_numbers<[1], [0], [0], [1], [0, 0, 1, 1], [], []>} : vector<2x2xf32>, vector<2x32xf32>, vector<2x32xf32> -> vector<2x32xf32>
      %c0_35 = arith.constant 0 : index
      %c0_36 = arith.constant 0 : index
      %55 = vector.load %arg8[%c0_35, %c0_36] : memref<32x128xf32, #tpu.memory_space<vmem>>, vector<32x128xf32>
      %cst_37 = arith.constant dense<0.000000e+00> : vector<2x128xf32>
      %56 = tpu.matmul %54, %55, %cst_37 {dimension_numbers = #tpu.dot_dimension_numbers<[1], [0], [0], [1], [0, 0, 1, 1], [], []>} : vector<2x32xf32>, vector<32x128xf32>, vector<2x128xf32> -> vector<2x128xf32>
      %c0_38 = arith.constant 0 : index
      %c0_39 = arith.constant 0 : index
      %57 = vector.load %arg9[%c0_38, %c0_39] : memref<1x128xf32, #tpu.memory_space<vmem>>, vector<1x128xf32>
      %58 = vector.broadcast %57 : vector<1x128xf32> to vector<2x128xf32>
      %59 = arith.addf %56, %58 : vector<2x128xf32>
      %cst_40 = arith.constant dense<0xFF800000> : vector<2xf32>
      %60 = vector.multi_reduction <maximumf>, %59, %cst_40 [1] : vector<2x128xf32> to vector<2xf32>
      %61 = vector.shape_cast %60 : vector<2xf32> to vector<2x1xf32>
      %62 = vector.broadcast %61 : vector<2x1xf32> to vector<2x128xf32>
      %63 = arith.subf %59, %62 : vector<2x128xf32>
      %64 = math.exp %63 : vector<2x128xf32>
      %cst_41 = arith.constant dense<0.000000e+00> : vector<2xf32>
      %65 = vector.multi_reduction <add>, %64, %cst_41 [1] : vector<2x128xf32> to vector<2xf32>
      %66 = vector.shape_cast %65 : vector<2xf32> to vector<2x1xf32>
      %67 = vector.broadcast %66 : vector<2x1xf32> to vector<2x128xf32>
      %68 = arith.divf %64, %67 : vector<2x128xf32>
      %c0_42 = arith.constant 0 : index
      %c0_43 = arith.constant 0 : index
      %69 = vector.load %arg10[%c0_42, %c0_43] : memref<2x128xf32, #tpu.memory_space<vmem>>, vector<2x128xf32>
      tpu.vector_store %arg10[%c0_42, %c0_43], %68 {strides = array<i32>} : memref<2x128xf32, #tpu.memory_space<vmem>>, vector<2x128xf32>,
    } else {
    }
    return
  }
  func.func @transform_0(%arg0: i32) -> (i32, i32, i32) {
    %c0_i32 = arith.constant 0 : i32
    %c0_i32_0 = arith.constant 0 : i32
    %c0_i32_1 = arith.constant 0 : i32
    return %c0_i32, %c0_i32_0, %arg0 : i32, i32, i32
  }
  func.func @transform_1(%arg0: i32) -> (i32, i32) {
    %c0_i32 = arith.constant 0 : i32
    %c0_i32_0 = arith.constant 0 : i32
    %c0_i32_1 = arith.constant 0 : i32
    return %c0_i32, %c0_i32_0 : i32, i32
  }
  func.func @transform_2(%arg0: i32) -> (i32, i32) {
    %c0_i32 = arith.constant 0 : i32
    %c0_i32_0 = arith.constant 0 : i32
    %c0_i32_1 = arith.constant 0 : i32
    return %c0_i32, %c0_i32_0 : i32, i32
  }
  func.func @transform_3(%arg0: i32) -> (i32, i32) {
    %c0_i32 = arith.constant 0 : i32
    %c0_i32_0 = arith.constant 0 : i32
    %c0_i32_1 = arith.constant 0 : i32
    return %c0_i32, %c0_i32_0 : i32, i32
  }
  func.func @transform_4(%arg0: i32) -> (i32, i32) {
    %c0_i32 = arith.constant 0 : i32
    %c0_i32_0 = arith.constant 0 : i32
    %c0_i32_1 = arith.constant 0 : i32
    return %c0_i32, %c0_i32_0 : i32, i32
  }
  func.func @transform_5(%arg0: i32) -> (i32, i32) {
    %c0_i32 = arith.constant 0 : i32
    %c0_i32_0 = arith.constant 0 : i32
    %c0_i32_1 = arith.constant 0 : i32
    return %c0_i32, %c0_i32_0 : i32, i32
  }
  func.func @transform_6(%arg0: i32) -> (i32, i32) {
    %c0_i32 = arith.constant 0 : i32
    %c0_i32_0 = arith.constant 0 : i32
    %c0_i32_1 = arith.constant 0 : i32
    return %c0_i32, %c0_i32_0 : i32, i32
  }
  func.func @transform_7(%arg0: i32) -> (i32, i32) {
    %c0_i32 = arith.constant 0 : i32
    %c0_i32_0 = arith.constant 0 : i32
    %c0_i32_1 = arith.constant 0 : i32
    return %c0_i32, %c0_i32_0 : i32, i32
  }
  func.func @transform_8(%arg0: i32) -> (i32, i32) {
    %c0_i32 = arith.constant 0 : i32
    %c0_i32_0 = arith.constant 0 : i32
    %c0_i32_1 = arith.constant 0 : i32
    return %c0_i32, %c0_i32_0 : i32, i32
  }
  func.func @transform_9(%arg0: i32) -> (i32, i32) {
    %c0_i32 = arith.constant 0 : i32
    %c0_i32_0 = arith.constant 0 : i32
    %c0_i32_1 = arith.constant 0 : i32
    return %c0_i32, %c0_i32_0 : i32, i32
  }
}

</mosaic_0001>

<bundles_post_ra>
// kernel: tpu_custom_call.1
= control target key start
LH: loop header
LB: loop body
LE: loop exit
PB: predicated region body
PF: predicated region fallthrough
CT: control target
= control target key end

     0   :  { %s710_s0 = inlined_call_operand.hbm [shape: f32[2,4,256], index: 0, kind: input, shape index: {}]   ;;  %s711_s1 = inlined_call_operand.hbm [shape: f32[4,32], index: 1, kind: input, shape index: {}]   ;;  %s712_s2 = inlined_call_operand.vmem [shape: f32[1,32], index: 2, kind: input, shape index: {}]   ;;  %s713_s3 = inlined_call_operand.hbm [shape: f32[32,32], index: 3, kind: input, shape index: {}]   ;;  %s714_s4 = inlined_call_operand.vmem [shape: f32[1,32], index: 4, kind: input, shape index: {}]   ;;  %s715_s5 = inlined_call_operand.vmem [shape: f32[1,16], index: 5, kind: input, shape index: {}]   ;;  %s716_s6 = inlined_call_operand.<no memory space> [shape: f32[1,1], index: 6, kind: input, shape index: {}]   ;;  %s717_s7 = inlined_call_operand.hbm [shape: f32[32,128], index: 7, kind: input, shape index: {}]   ;;  %s718_s8 = inlined_call_operand.vmem [shape: f32[1,128], index: 8, kind: input, shape index: {}]   ;;  %s719_s9 = inlined_call_operand.hbm [shape: f32[2,128], index: 9, kind: output, shape index: {}]  }
   0x1   :  { %v14_v0 = vstv %s716_s6 }
   0x2   :  { %15 = vst [vmem:[#allocation3] sm:$0x1] %v14_v0 }
   0x3   :  { %16 = vsyncpa [#allocation5], 0 }
   0x4   :  { %17 = vsyncpa [#allocation8], 0 }
   0x5   :  { %18 = vsyncpa [#allocation11], 0  ;;  %s38_s13 = sshll.u32 %s711_s1, 4  ;;  %s39_s13 = int_to_ptr.hbm [resolvable:$true] %s38_s13 }
   0x6   :  { %19 = vsyncpa [#allocation6], 0  ;;  %s597_s14 = smov [#allocation7]   ;;  %s24_s18 = sshll.u32 %s710_s0, 4  ;;  %s25_s18 = int_to_ptr.hbm [resolvable:$true] %s24_s18 }
   0x7   :  { %s40_s15 = sshll.u32 %s597_s14, 4  ;;  %s598_s6 = smov [#allocation4]   ;;  %s41_s15 = int_to_ptr.vmem [resolvable:$true] %s40_s15 }
   0x8   :  { %43 = dma.hbm_to_vmem [thread:$0]  %s39_s13, 64, %s41_s15, [#allocation8]  }
   0x9   :  { %s26_s19 = sshll.u32 %s598_s6, 4  ;;  %s599_s20 = smov 128   ;;  %s27_s19 = int_to_ptr.vmem [resolvable:$true] %s26_s19 }
   0xa   :  { %s600_s21 = smov 8   ;;  %s50_s1 = sshll.u32 %s713_s3, 4  ;;  %s51_s1 = int_to_ptr.hbm [resolvable:$true] %s50_s1 }
   0xb   :  { %32 = dma.hbm_to_vmem [thread:$0]  %s25_s18, 256, %s27_s19, [#allocation5], %s599_s20, %s599_s20, %s600_s21  }
   0xc   :  { %s601_s24 = smov [#allocation9]   ;;  %s69_s0 = sshll.u32 %s717_s7, 4  ;;  %s70_s0 = int_to_ptr.hbm [resolvable:$true] %s69_s0 }
   0xd   :  { %s52_s25 = sshll.u32 %s601_s24, 4  ;;  %s602_s28 = smov [#allocation10]   ;;  %s53_s25 = int_to_ptr.vmem [resolvable:$true] %s52_s25 }
   0xe   :  { %58 = dma.hbm_to_vmem [thread:$0]  %s51_s1, 512, %s53_s25, [#allocation8], %s599_s20, %s599_s20, %s600_s21  }
   0xf   :  { %s71_s29 = sshll.u32 %s602_s28, 4  ;;  %s72_s29 = int_to_ptr.vmem [resolvable:$true] %s71_s29 }
  0x10   :  { %77 = dma.hbm_to_vmem [thread:$0]  %s70_s0, 512, %s72_s29, [#allocation11], %s599_s20, %s599_s20, %s600_s21  }
  0x11   :  { %589 = dma.done.wait [#allocation5], 256  }
  0x12   :  { %590 = vsyncadd [#allocation5], 4294967040 }
  0x13   :  { %591 = dma.done.wait [#allocation8], 576  }
  0x14   :  { %592 = vsyncadd [#allocation8], 4294966720 }
  0x15   :  { %593 = dma.done.wait [#allocation11], 512  }
  0x16   :  { %594 = vsyncadd [#allocation11], 4294966784  ;;  %v603_v1 = vmov 0.0   ;;  %v102_v2 = vld [vmem:[#allocation4] sm:$0xf]  ;;  %vm119_vm0 = vcmask 1043456   ;;  %v133_v20 = vlaneseq }
  0x17   :  { %100 = vst [vmem:[#allocation2] sm:$0xf] %v603_v1  ;;  %v104_v3 = vld [vmem:[#allocation4 + $0x4] sm:$0xf]  ;;  %v103_v4 = vld [vmem:[#allocation4 + $0x8] sm:$0xf] }
  0x18   :  { %101 = vst [vmem:[#allocation2 + $0x4] sm:$0xf] %v603_v1  ;;  %v106_v5 = vadd.f32 %v104_v3, %v102_v2  ;;  %v105_v7 = vld [vmem:[#allocation4 + $0xc] sm:$0xf]  ;;  %v126_v16 = vld [vmem:[#allocation7] sm:$0xf] }
  0x19   :  { %v107_v8 = vadd.f32 %v105_v7, %v103_v4  ;;  %425 = vmatpush.msk.msra.mxu0 %vm119_vm0, %v126_v16  ;;  %v168_v17 = vld [vmem:[#allocation9 + $0x18] sm:$0xff]  ;;  %v167_v18 = vld [vmem:[#allocation9 + $0x10] sm:$0xff]  ;;  %v672_v21 = vand.u32 127, %v133_v20  ;;  %vm137_vm1 = vcmask 1041409   ;;  %vm139_vm2 = vcmask 31744   ;;  %v166_v26 = vld [vmem:[#allocation9 + $0x8] sm:$0xff] }
  0x1a   :  { %189 = vmatpush.msra.mxu1 %v168_v17  ;;  %v165_v27 = vld [vmem:[#allocation9] sm:$0xff]  ;;  %vm173_vm3 = vcmask 261120   ;;  %vm327_vm4 = vcmask 1041408   ;;  %s604_s11 = smov 112   ;;  %v605_v37 = vmov 0   ;;  %vm253_vm9 = vcmask 123904  }
  0x1b   :  { %v446_v28 = vld [vmem:[%s712_s2] ss:$0 sm:$0xff]  ;;  %443 = vset.pattern.permute.xlu0 %v605_v37  ;;  %444 = vset.pattern.permute.xlu2 %v605_v37  ;;  %v449_v40 = vld [vmem:[#allocation3] ss:$0 sm:$0xff]  ;;  %vm275_vm14 = vcmask 9216   ;;  %vm324_vm15 = vcmask 15360  }
  0x1c   :  { %190 = vmatpush.msra.mxu1 %v167_v18  ;;  %v447_v31 = vld [vmem:[%s714_s4] ss:$0 sm:$0xff]  ;;  %445 = vset.pattern.permute.xlu1 %v605_v37  ;;  %s413_s16 = sshll.u32 %s719_s9, 4  ;;  %s414_s16 = int_to_ptr.hbm [resolvable:$true] %s413_s16 }
  0x1d   :  { %v448_v56 = vld [vmem:[%s715_s5] ss:$0 sm:$0xff] }
  0x1e   :  { %v108_v6 = vld [vmem:[#allocation2] sm:$0xf]  ;;  %191 = vmatpush.msra.mxu1 %v166_v26 }
  0x1f   :  { %v109_v9 = vld [vmem:[#allocation2 + $0x4] sm:$0xf]  ;;  %v110_v10 = vadd.f32 %v108_v6, %v106_v5 }
  0x20   :  { %v111_v11 = vadd.f32 %v109_v9, %v107_v8  ;;  %192 = vmatpush.msra.mxu1 %v165_v27 }
  0x21   :  { %112 = vst [vmem:[#allocation2] sm:$0xf] %v110_v10 }
  0x22   :  { %113 = vst [vmem:[#allocation2 + $0x4] sm:$0xf] %v111_v11 }
  0x28   :  { %v117_v12 = vld [vmem:[#allocation2] sm:$0xf] }
  0x29   :  { %v120_v13 = vsel %vm119_vm0, %v117_v12, 0.0  ;;  %v118_v14 = vld [vmem:[#allocation2 + $0x4] sm:$0xf] }
  0x2a   :  { %121 = vadd.xlane.f32.xlu0 %v120_v13  ;;  %v123_v15 = vsel %vm119_vm0, %v118_v14, 0.0 }
  0x32   :  { %124 = vadd.xlane.f32.xlu0 %v123_v15 }
  0x46   :  { %264 = vperm.xlu0 %443, %v449_v40  }
  0x9d   :  { %v122_v19 = vpop.xlane.xlu0 %121 }
  0x9e   :  { %v135_v23 = vperm.slane %v122_v19, %v672_v21 }
  0xa5   :  { %v125_v22 = vpop.xlane.xlu0 %124 }
  0xa6   :  { %v136_v24 = vperm.slane %v125_v22, %v672_v21 }
  0xa8   :  { %v138_v25 = vsel %vm137_vm1, %v136_v24, %v135_v23 }
  0xa9   :  { %426 = vmatmul.msk.f32.vlgmr.msra.gmra.mxu0 %vm139_vm2, %v138_v25 }
  0xb8   :  { %v265_v11 = vpop.permute.xlu0 %264 }
 0x126   :  { %v162_v29 = vpop.f32.mrf.mxu0 }
 0x127   :  { %v163_v30 = vadd.f32 %v446_v28, %v162_v29 }
 0x129   :  { %427 = vmatmul.msk.f32.vlgmr.msra.gmra.mxu1 %vm173_vm3, %v163_v30  ;;  %430 = vmatpush.msk.msra.mxu2 %vm327_vm4, %v163_v30 }
 0x1a6   :  { %v194_v32 = vpop.f32.mrf.mxu1 }
 0x1a7   :  { %v195_v33 = vadd.f32 %v447_v31, %v194_v32 }
 0x1a9   :  { %v199_v34 = vperm.slane %v195_v33, 0  ;;  %v198_v35 = vrot.slane %v195_v33, 1 }
 0x1ab   :  { %201 = vrot.lane.b32.xlu1 %v199_v34, %s604_s11  ;;  %v200_v36 = vperm.slane %v198_v35, 0 }
 0x1b3   :  { %203 = vrot.lane.b32.xlu1 %v200_v36, %s604_s11 }
 0x21d   :  { %v202_v38 = vpop.permute.xlu1 %201 }
 0x21e   :  { %v207_v39 = vadd.f32 %v202_v38, %v195_v33 }
 0x220   :  { %v428_v41 = vmul.f32 -1.442695, %v207_v39 }
 0x222   :  { %451 = vpow2.f32 %v428_v41  ;;  %v353_v41 = vld [vmem:[#allocation10 + $0x18] sm:$0xff] }
 0x223   :  { %373 = vmatpush.msra.mxu3 %v353_v41 }
 0x225   :  { %v204_v42 = vpop.permute.xlu1 %203 }
 0x226   :  { %v208_v43 = vadd.f32 %v204_v42, %v195_v33  ;;  %v352_v42 = vld [vmem:[#allocation10 + $0x10] sm:$0xff] }
 0x227   :  { %374 = vmatpush.msra.mxu3 %v352_v42 }
 0x228   :  { %v452_v44 = vpop.eup %451  ;;  %v429_v45 = vmul.f32 -1.442695, %v208_v43  ;;  %v351_v43 = vld [vmem:[#allocation10 + $0x8] sm:$0xff] }
 0x229   :  { %v215_v46 = vadd.f32 1.0, %v452_v44  ;;  %375 = vmatpush.msra.mxu3 %v351_v43 }
 0x22a   :  { %453 = vpow2.f32 %v429_v45 }
 0x22b   :  { %455 = vrcp.f32 %v215_v46  ;;  %v228_v52 = vand.u32 2147483648, %v215_v46  ;;  %v226_v54 = vand.u32 2147483647, %v215_v46  ;;  %vm222_vm6 = vweird.f32 %v215_v46 }
 0x22d   :  { %v229_v58 = vor.u32 1.1754944e-38, %v228_v52  ;;  %vm227_vm8 = vcmp.eq.f32.partialorder %v226_v54, 8.507059e+37 }
 0x230   :  { %v454_v47 = vpop.eup %453 }
 0x231   :  { %v456_v48 = vpop.eup %455  ;;  %v216_v49 = vadd.f32 1.0, %v454_v47 }
 0x232   :  { %v218_v50 = vmul.f32 %v456_v48, %v215_v46  ;;  %vm223_vm5 = vweird.f32 %v456_v48 }
 0x233   :  { %457 = vrcp.f32 %v216_v49  ;;  %vm224_vm7 = vmor %vm222_vm6, %vm223_vm5  ;;  %v243_v0 = vand.u32 2147483648, %v216_v49  ;;  %v241_v3 = vand.u32 2147483647, %v216_v49  ;;  %vm237_vm11 = vweird.f32 %v216_v49 }
 0x234   :  { %v219_v51 = vsub.f32 1.0, %v218_v50 }
 0x235   :  { %v244_v5 = vor.u32 1.1754944e-38, %v243_v0  ;;  %vm242_vm13 = vcmp.eq.f32.partialorder %v241_v3, 8.507059e+37 }
 0x236   :  { %v220_v53 = vmul.f32 %v456_v48, %v219_v51  ;;  %v450_v51 = vld [vmem:[%s718_s8] ss:$0 sm:$0xff]  ;;  %s606_s8 = smov [#allocation12]  }
 0x237   :  { %s411_s13 = sshll.u32 %s606_s8, 4  ;;  %s412_s13 = int_to_ptr.vmem [resolvable:$true] %s411_s13 }
 0x238   :  { %v221_v55 = vadd.f32 %v456_v48, %v220_v53 }
 0x239   :  { %v458_v57 = vpop.eup %457 }
 0x23a   :  { %v225_v59 = vsel %vm224_vm7, %v456_v48, %v221_v55  ;;  %v233_v60 = vmul.f32 %v458_v57, %v216_v49  ;;  %vm238_vm10 = vweird.f32 %v458_v57  ;;  %v350_v49 = vld [vmem:[#allocation10] sm:$0xff] }
 0x23b   :  { %v230_v61 = vsel %vm227_vm8, %v229_v58, %v225_v59  ;;  %vm239_vm12 = vmor %vm237_vm11, %vm238_vm10  ;;  %376 = vmatpush.msra.mxu3 %v350_v49 }
 0x23c   :  { %v251_v62 = vmul.f32 %v448_v56, %v230_v61  ;;  %v234_v63 = vsub.f32 1.0, %v233_v60 }
 0x23e   :  { %v254_v1 = vsel %vm253_vm9, %v251_v62, 0.0  ;;  %v235_v2 = vmul.f32 %v458_v57, %v234_v63 }
 0x23f   :  { %255 = vadd.xlane.f32.xlu2 %v254_v1 }
 0x240   :  { %v236_v4 = vadd.f32 %v458_v57, %v235_v2 }
 0x242   :  { %v240_v6 = vsel %vm239_vm12, %v458_v57, %v236_v4 }
 0x243   :  { %v245_v7 = vsel %vm242_vm13, %v244_v5, %v240_v6 }
 0x244   :  { %v252_v8 = vmul.f32 %v448_v56, %v245_v7 }
 0x246   :  { %v257_v9 = vsel %vm253_vm9, %v252_v8, 0.0 }
 0x247   :  { %258 = vadd.xlane.f32.xlu2 %v257_v9 }
 0x2b2   :  { %v256_v10 = vpop.xlane.xlu2 %255 }
 0x2b3   :  { %v267_v12 = vadd.f32 %v265_v11, %v256_v10 }
 0x2b5   :  { %v271_v15 = vperm.slane %v267_v12, %v672_v21 }
 0x2ba   :  { %v259_v13 = vpop.xlane.xlu2 %258 }
 0x2bb   :  { %v268_v14 = vadd.f32 %v265_v11, %v259_v13 }
 0x2bd   :  { %v272_v16 = vperm.slane %v268_v14, %v672_v21 }
 0x2bf   :  { %v273_v17 = vsel %vm137_vm1, %v272_v16, %v271_v15 }
 0x2c0   :  { %v276_v18 = vsel %vm275_vm14, %v273_v17, -inf }
 0x2c1   :  { %277 = vmax.xlane.f32.xlu1 %v276_v18 }
 0x334   :  { %v278_v19 = vpop.xlane.xlu1 %277 }
 0x335   :  { %v280_v20 = vperm.slane %v278_v19, 0  ;;  %v281_v22 = vperm.slane %v278_v19, 1 }
 0x337   :  { %v284_v23 = vsub.f32 %v267_v12, %v280_v20  ;;  %v285_v25 = vsub.f32 %v268_v14, %v281_v22 }
 0x339   :  { %v286_v24 = vmul.f32 1.442695, %v284_v23  ;;  %v288_v26 = vmul.f32 1.442695, %v285_v25 }
 0x33b   :  { %459 = vpow2.f32 %v286_v24 }
 0x33c   :  { %461 = vpow2.f32 %v288_v26 }
 0x341   :  { %v460_v27 = vpop.eup %459 }
 0x342   :  { %293 = vperm.xlu2 %444, %v460_v27   ;;  %v462_v28 = vpop.eup %461 }
 0x34a   :  { %296 = vperm.xlu2 %444, %v462_v28  }
 0x39c   :  { %v294_v29 = vpop.permute.xlu2 %293 }
 0x39d   :  { %v298_v31 = vperm.slane %v294_v29, %v672_v21 }
 0x3a4   :  { %v297_v30 = vpop.permute.xlu2 %296 }
 0x3a5   :  { %v299_v32 = vperm.slane %v297_v30, %v672_v21 }
 0x3a7   :  { %v300_v33 = vsel %vm137_vm1, %v299_v32, %v298_v31 }
 0x3a8   :  { %v302_v34 = vsel %vm275_vm14, %v300_v33, 0.0 }
 0x3a9   :  { %303 = vadd.xlane.f32.xlu2 %v302_v34 }
 0x41c   :  { %v304_v35 = vpop.xlane.xlu2 %303 }
 0x41d   :  { %463 = vrcp.f32 %v304_v35 }
 0x423   :  { %v464_v36 = vpop.eup %463 }
 0x424   :  { %v308_v37 = vperm.slane %v464_v36, 1  ;;  %v307_v38 = vperm.slane %v464_v36, 0 }
 0x426   :  { %v312_v39 = vmul.f32 %v462_v28, %v308_v37  ;;  %v311_v40 = vmul.f32 %v460_v27, %v307_v38 }
 0x428   :  { %319 = vperm.xlu1 %445, %v312_v39   ;;  %316 = vperm.xlu0 %443, %v311_v40  }
 0x49a   :  { %v320_v44 = vpop.permute.xlu1 %319  ;;  %v317_v45 = vpop.permute.xlu0 %316 }
 0x49b   :  { %v322_v46 = vperm.slane %v320_v44, %v672_v21  ;;  %v321_v47 = vperm.slane %v317_v45, %v672_v21 }
 0x49d   :  { %v323_v48 = vsel %vm137_vm1, %v322_v46, %v321_v47 }
 0x49e   :  { %431 = vmatmul.msk.f32.vlgmr.msra.gmra.mxu2 %vm324_vm15, %v323_v48 }
 0x521   :  { %v347_v50 = vpop.f32.mrf.mxu2 }
 0x522   :  { %432 = vmatmul.msk.f32.vlgmr.msra.gmra.mxu3 %vm173_vm3, %v347_v50 }
 0x5a5   :  { %v378_v52 = vpop.f32.mrf.mxu3 }
 0x5a6   :  { %v379_v53 = vadd.f32 %v450_v51, %v378_v52 }
 0x5a8   :  { %v381_v54 = vsel %vm327_vm4, %v379_v53, -inf }
 0x5a9   :  { %382 = vmax.xlane.f32.xlu0 %v381_v54 }
 0x61c   :  { %v383_v55 = vpop.xlane.xlu0 %382 }
 0x61d   :  { %v384_v21 = vsub.f32 %v379_v53, %v383_v55 }
 0x61f   :  { %v385_v56 = vmul.f32 1.442695, %v384_v21 }
 0x621   :  { %465 = vpow2.f32 %v385_v56 }
 0x627   :  { %v466_v57 = vpop.eup %465 }
 0x628   :  { %v387_v58 = vsel %vm327_vm4, %v466_v57, 0.0 }
 0x629   :  { %388 = vadd.xlane.f32.xlu1 %v387_v58 }
 0x69c   :  { %v389_v59 = vpop.xlane.xlu1 %388 }
 0x69d   :  { %467 = vrcp.f32 %v389_v59  ;;  %v401_v63 = vand.u32 2147483648, %v389_v59  ;;  %v399_v1 = vand.u32 2147483647, %v389_v59  ;;  %vm395_vm1 = vweird.f32 %v389_v59 }
 0x69f   :  { %v402_v3 = vor.u32 1.1754944e-38, %v401_v63  ;;  %vm400_vm3 = vcmp.eq.f32.partialorder %v399_v1, 8.507059e+37 }
 0x6a3   :  { %v468_v60 = vpop.eup %467 }
 0x6a4   :  { %v391_v61 = vmul.f32 %v468_v60, %v389_v59  ;;  %vm396_vm0 = vweird.f32 %v468_v60 }
 0x6a5   :  { %vm397_vm2 = vmor %vm395_vm1, %vm396_vm0 }
 0x6a6   :  { %v392_v62 = vsub.f32 1.0, %v391_v61 }
 0x6a8   :  { %v393_v0 = vmul.f32 %v468_v60, %v392_v62 }
 0x6aa   :  { %v394_v2 = vadd.f32 %v468_v60, %v393_v0 }
 0x6ac   :  { %v398_v4 = vsel %vm397_vm2, %v468_v60, %v394_v2 }
 0x6ad   :  { %v403_v5 = vsel %vm400_vm3, %v402_v3, %v398_v4 }
 0x6ae   :  { %v404_v6 = vmul.f32 %v466_v57, %v403_v5 }
 0x6b0   :  { %405 = vst [vmem:[#allocation12] sm:$0x3] %v404_v6 }
 0x6b1   :  { %416 = dma.vmem_to_hbm [thread:$0]  %s412_s13, 32, %s414_s16, [#allocation6]  }
 0x6b2   :  { %595 = dma.done.wait [#allocation6], 32  }
 0x6b3   :  { %596 = vsyncadd [#allocation6], 4294967264 }
 0x6b4   :  { %421 = vsyncpa [#allocation5], 1 }
 0x6b5   :  { %422 = vsyncpa [#allocation8], 1 }
 0x6b6   :  { %423 = vsyncpa [#allocation11], 1 }
 0x6b7   :  { %424 = vsyncpa [#allocation6], 1 }

</bundles_post_ra>
